<compile_context>
chip_gen: v5e
topology: v5e:2x2
jax: 0.10.0
libtpu: 0.0.40
codegen_flags: <defaults>
</compile_context>

<pallas_src>
import functools

import jax
import jax.numpy as jnp
from jax.experimental import pallas as pl
from jax.experimental.pallas import tpu as pltpu


_LANE = 128
_BLOCK_VMEM_BUDGET = 32 * 1024 * 1024   # budget for pipelined block buffers (all gens)
_MIN_MEGACORE_STEPS = 4                 # >= 2 grid steps per TensorCore on v7x
_MEGACORE_TILE_FLOOR = 512              # don't shrink tiles below this chasing parallelism
_BF16_MATMUL_MIN_DIM = 512              # bf16 MXU operands only once the matmul can bind


def _round_up(x, m):
    return ((x + m - 1) // m) * m


def _round_down_to(x, m):
    return max(m, (x // m) * m)


def _cluster_kernel(x_ref, w_ref, o_ref, *, normalize_x: bool, matmul_dtype):
    # x_ref: (1, C, t)  channels on sublanes, pixels on lanes
    # w_ref: (O, C)     pre-normalized effective weight; constant block index -> resident
    # o_ref: (1, O, t)  lane-dense store path
    x = x_ref[0].astype(jnp.float32)      # (C, t)
    w = w_ref[...].astype(jnp.float32)    # (O, C)

    if normalize_x:
        # F.normalize(x, dim=channels): x / max(||x||, 1e-12) == x * rsqrt(max(sumsq, 1e-24))
        sumsq = jnp.sum(x * x, axis=0, keepdims=True)            # (1, t) sublane reduce
        x = x * jax.lax.rsqrt(jnp.maximum(sumsq, 1e-24))         # single EUP op

    o_ref[0] = jnp.dot(
        w.astype(matmul_dtype),
        x.astype(matmul_dtype),
        preferred_element_type=jnp.float32,
    ).astype(o_ref.dtype)


def _pick_pixel_tile(HW, C, O, N):
    """Lane-dense pixel tile sized from the VMEM budget and megacore step count."""
    bytes_per_lane = 2 * 4 * (C + O)     # double-buffered f32 x-block + out-block, per lane
    weight_bytes = 2 * 4 * O * C         # weight block (conservatively assume double-buffered)
    avail = max(_BLOCK_VMEM_BUDGET - weight_bytes, bytes_per_lane * _LANE)
    t_cap = _round_down_to(avail // bytes_per_lane, _LANE)
    t = min(_round_up(HW, _LANE), t_cap)
    # v7x megacore: make sure there are enough grid steps to shard across both
    # TensorCores, but never go below 512 lanes (HBM-roofline efficiency floor).
    while t > _MEGACORE_TILE_FLOOR and N * pl.cdiv(HW, t) < _MIN_MEGACORE_STEPS:
        t = max(_MEGACORE_TILE_FLOOR, _round_down_to(t // 2, _LANE))
    return t


def conv_cluster_probe(x_nchw, weight_v, *, not_norm=False):
    """Forward pass of ConvClusterProbe.

    x_nchw  : (N, C, H, W) float32
    weight_v: (O, C, 1, 1) float32  -- the weight_norm 'v' parameter
    """
    N, C, H, W = x_nchw.shape
    O = weight_v.shape[0]
    HW = H * W

    # Pure reshapes (no data movement): NCHW -> (N, C, H*W); weight -> (O, C)
    x3 = x_nchw.reshape(N, C, HW)
    v = weight_v.reshape(O, C)

    if not_norm:
        # weight_norm init sets g = ||v|| per out channel -> w_eff == v exactly
        w_eff = v
    else:
        # forward forces g = ones -> w_eff = v / ||v||
        # NOTE: like PyTorch weight_norm, an all-zero row yields NaN (no eps) -- intentional.
        w_eff = v / jnp.sqrt(jnp.sum(v * v, axis=1, keepdims=True))
    w_eff = w_eff.astype(jnp.float32)

    t_pix = _pick_pixel_tile(HW, C, O, N)
    grid = (N, pl.cdiv(HW, t_pix))

    # Explicit scoped-VMEM limit: the default is only 16 MiB on v5e / 32 MiB on
    # v6e & v7x.  Footprint = double-buffered x/out blocks + weight block.
    footprint = 2 * 4 * t_pix * (C + O) + 2 * 4 * O * C
    vmem_limit = int(min(max(footprint + (16 << 20), 48 << 20), 96 << 20))

    normalize_x = not not_norm
    matmul_dtype = (
        jnp.bfloat16
        if (C >= _BF16_MATMUL_MIN_DIM and O >= _BF16_MATMUL_MIN_DIM)
        else jnp.float32
    )

    cost = pl.CostEstimate(
        flops=2 * N * HW * O * C,
        transcendentals=(N * HW) if normalize_x else 0,
        bytes_accessed=4 * (N * HW * (C + O) + O * C),
    )

    out3 = pl.pallas_call(
        functools.partial(
            _cluster_kernel, normalize_x=normalize_x, matmul_dtype=matmul_dtype
        ),
        out_shape=jax.ShapeDtypeStruct((N, O, HW), x_nchw.dtype),
        grid=grid,
        in_specs=[
            # x: one image slab (channels x pixel-tile) per grid step
            pl.BlockSpec((1, C, t_pix), lambda n, p: (n, 0, p)),
            # weight: full, same block every step (stays resident in VMEM)
            pl.BlockSpec((O, C), lambda n, p: (0, 0)),
        ],
        out_specs=pl.BlockSpec((1, O, t_pix), lambda n, p: (n, 0, p)),
        compiler_params=pltpu.CompilerParams(
            dimension_semantics=("parallel", "parallel"),
            vmem_limit_bytes=vmem_limit,
        ),
        cost_estimate=cost,
    )(x3, w_eff)

    # Free reshape back: (N, O, H*W) -> NCHW
    return out3.reshape(N, O, H, W)


def _reference(x_nchw, weight_v, not_norm=False):
    """Plain-JAX replica of the PyTorch forward for verification."""
    O, C = weight_v.shape[0], weight_v.shape[1]
    w = weight_v.reshape(O, C)
    if not_norm:
        w_eff = w  # g == ||v|| at init
        x = x_nchw
    else:
        w_eff = w / jnp.sqrt(jnp.sum(w * w, axis=1, keepdims=True))
        x = x_nchw / jnp.maximum(
            jnp.sqrt(jnp.sum(x_nchw * x_nchw, axis=1, keepdims=True)), 1e-12
        )
    return jnp.einsum(
        "nchw,oc->nohw", x, w_eff, precision=jax.lax.Precision.HIGHEST
    )


if __name__ == "__main__":
    key = jax.random.PRNGKey(0)
    kx, kw, kr = jax.random.split(key, 3)

    N, C_in, H, W = 2, 32, 16, 16
    C_out = 64

    x = jax.random.normal(kx, (N, C_in, H, W), dtype=jnp.float32)
    # Deterministic synthetic init of the conv weight_v (O, C, 1, 1)
    bound = 1.0 / jnp.sqrt(float(C_in))
    weight_v = jax.random.uniform(
        kw, (C_out, C_in, 1, 1), dtype=jnp.float32, minval=-bound, maxval=bound
    )

    # Default branch (normalize x, g forced to ones)
    out = jax.block_until_ready(conv_cluster_probe(x, weight_v, not_norm=False))
    ref = _reference(x, weight_v, not_norm=False)
    assert out.shape == (N, C_out, H, W)
    assert jnp.allclose(out, ref, atol=1e-5, rtol=1e-5), float(
        jnp.max(jnp.abs(out - ref))
    )

    # not_norm branch (plain conv with w_eff == v)
    out_nn = jax.block_until_ready(conv_cluster_probe(x, weight_v, not_norm=True))
    ref_nn = _reference(x, weight_v, not_norm=True)
    assert jnp.allclose(out_nn, ref_nn, atol=1e-5, rtol=1e-5), float(
        jnp.max(jnp.abs(out_nn - ref_nn))
    )

    # Ragged spatial extent (14x14 -> HW=196, not a multiple of 128): exercises
    # the cdiv grid and the padded/masked last pixel tile.
    x_r = jax.random.normal(kr, (1, C_in, 14, 14), dtype=jnp.float32)
    out_r = jax.block_until_ready(conv_cluster_probe(x_r, weight_v, not_norm=False))
    ref_r = _reference(x_r, weight_v, not_norm=False)
    assert out_r.shape == (1, C_out, 14, 14)
    assert jnp.allclose(out_r, ref_r, atol=1e-5, rtol=1e-5), float(
        jnp.max(jnp.abs(out_r - ref_r))
    )

    print("KERNEL_OK")
</pallas_src>

<mosaic_0001>
module attributes {stable_mosaic.version = 11 : i64} {
  func.func @_cluster_kernel(%arg0: i32, %arg1: i32, %arg2: memref<1x32x256xf32, #tpu.memory_space<vmem>>, %arg3: memref<64x32xf32, #tpu.memory_space<vmem>>, %arg4: memref<1x64x256xf32, #tpu.memory_space<vmem>>) attributes {dimension_semantics = [#tpu.dimension_semantics<parallel>, #tpu.dimension_semantics<parallel>], iteration_bounds = array<i64: 2, 1>, scalar_prefetch = 0 : i64, scratch_operands = 0 : i64, tpu.core_type = #tpu.core_type<tc>, window_params = [{transform_indices = @transform_0, window_bounds = array<i64: 1, 32, 256>}, {pipeline_mode = #tpu.pipeline_mode<synchronous>, transform_indices = @transform_1, window_bounds = array<i64: 64, 32>}, {transform_indices = @transform_2, window_bounds = array<i64: 1, 64, 256>}]} {
    %c0 = arith.constant 0 : index
    %c0_0 = arith.constant 0 : index
    %c0_1 = arith.constant 0 : index
    %0 = vector.load %arg2[%c0, %c0_0, %c0_1] : memref<1x32x256xf32, #tpu.memory_space<vmem>>, vector<1x32x256xf32>
    %1 = vector.shape_cast %0 : vector<1x32x256xf32> to vector<32x256xf32>
    %c0_2 = arith.constant 0 : index
    %c0_3 = arith.constant 0 : index
    %2 = vector.load %arg3[%c0_2, %c0_3] : memref<64x32xf32, #tpu.memory_space<vmem>>, vector<64x32xf32>
    %3 = arith.mulf %1, %1 : vector<32x256xf32>
    %cst = arith.constant dense<0.000000e+00> : vector<256xf32>
    %4 = vector.multi_reduction <add>, %3, %cst [0] : vector<32x256xf32> to vector<256xf32>
    %5 = vector.shape_cast %4 : vector<256xf32> to vector<1x256xf32>
    %cst_4 = arith.constant 1.000000e-24 : f32
    %6 = vector.broadcast %cst_4 : f32 to vector<1x256xf32>
    %7 = arith.maximumf %5, %6 : vector<1x256xf32>
    %8 = math.rsqrt %7 : vector<1x256xf32>
    %9 = vector.broadcast %8 : vector<1x256xf32> to vector<32x256xf32>
    %10 = arith.mulf %1, %9 : vector<32x256xf32>
    %cst_5 = arith.constant dense<0.000000e+00> : vector<64x256xf32>
    %11 = tpu.matmul %2, %10, %cst_5 {dimension_numbers = #tpu.dot_dimension_numbers<[1], [0], [0], [1], [0, 0, 1, 1], [], []>} : vector<64x32xf32>, vector<32x256xf32>, vector<64x256xf32> -> vector<64x256xf32>
    %c0_6 = arith.constant 0 : index
    %c0_7 = arith.constant 0 : index
    %c0_8 = arith.constant 0 : index
    %12 = vector.load %arg4[%c0_6, %c0_7, %c0_8] : memref<1x64x256xf32, #tpu.memory_space<vmem>>, vector<1x64x256xf32>
    %13 = vector.shape_cast %12 : vector<1x64x256xf32> to vector<64x256xf32>
    %14 = vector.shape_cast %11 : vector<64x256xf32> to vector<1x64x256xf32>
    tpu.vector_store %arg4[%c0_6, %c0_7, %c0_8], %14 {strides = array<i32>} : memref<1x64x256xf32, #tpu.memory_space<vmem>>, vector<1x64x256xf32>,
    return
  }
  func.func @transform_0(%arg0: i32, %arg1: i32) -> (i32, i32, i32) {
    %c0_i32 = arith.constant 0 : i32
    %c0_i32_0 = arith.constant 0 : i32
    return %arg0, %c0_i32, %arg1 : i32, i32, i32
  }
  func.func @transform_1(%arg0: i32, %arg1: i32) -> (i32, i32) {
    %c0_i32 = arith.constant 0 : i32
    %c0_i32_0 = arith.constant 0 : i32
    %c0_i32_1 = arith.constant 0 : i32
    return %c0_i32, %c0_i32_0 : i32, i32
  }
  func.func @transform_2(%arg0: i32, %arg1: i32) -> (i32, i32, i32) {
    %c0_i32 = arith.constant 0 : i32
    %c0_i32_0 = arith.constant 0 : i32
    return %arg0, %c0_i32, %arg1 : i32, i32, i32
  }
}

</mosaic_0001>

<bundles_post_ra>
// kernel: tpu_custom_call.1
= control target key start
LH: loop header
LB: loop body
LE: loop exit
PB: predicated region body
PF: predicated region fallthrough
CT: control target
= control target key end

     0   :  { %7 = vsyncpa [#allocation3], 0  ;;  %s918_s0 = inlined_call_operand.hbm [shape: f32[2,32,256], index: 0, kind: input, shape index: {}]   ;;  %s919_s1 = inlined_call_operand.vmem [shape: f32[64,32], index: 1, kind: input, shape index: {}]   ;;  %s920_s2 = inlined_call_operand.hbm [shape: f32[2,64,256], index: 2, kind: output, shape index: {}]  }
   0x1   :  { %9 = vsyncpa [#allocation3 + $0x1], 0 }
   0x2   :  { %10 = vsyncpa [#allocation4], 0 }
   0x3   :  { %12 = vsyncpa [#allocation4 + $0x1], 0  ;;  %s728_s9 = smov 0   ;;  %s730_s10 = smov 0  }
   0x4   :  { %s732_s11 = smov 0   ;;  %s734_s12 = smov 0  }
   0x5   :  { %s736_s13 = smov 0   ;;  %s738_s14 = smov 0  }
   0x6 LB: > { %s484_s15 = sadd.s32 4294967295, %s707_s14   ;;  %s485_s16 = sadd.s32 4294967294, %s707_s14   ;;  %s707_s14 = sphi %s738_s14, %s18_s14   ;;  %s703_s13 = sphi %s736_s13, %s929_s13   ;;  %s699_s12 = sphi %s734_s12, %s928_s12   ;;  %s695_s11 = sphi %s732_s11, %s927_s11   ;;  %s691_s10 = sphi %s730_s10, %s926_s10   ;;  %s687_s9 = sphi %s728_s9, %s925_s9  }
   0x7   : > { %s30_s17 = sadd.s32 1, %s703_s13  ;;  %s39_s18 = sadd.s32 1, %s695_s11 }
   0x8   : > { %p32_p0 = scmp.ge.s32.totalorder %s30_s17, 2  ;;  %p46_p1 = scmp.ne.s32.totalorder %s695_s11, %s691_s10 }
   0x9   : > { %p47_p2 = scmp.eq.s32.totalorder %s707_s14, 0  ;;  %p52_p3 = scmp.ne.s32.totalorder %s691_s10, %s687_s9 }
   0xa   : > { %s931_s17 = smov (%p32_p0, %s30_s17), 0  ;;  %p53_p5 = scmp.eq.s32.totalorder %s484_s15, 0 }
   0xb   : > { %p769_p4 = por %p47_p2, %p46_p1  ;;  %s34_s20 = ssub.s32 %s703_s13, %s931_s17 }
   0xc   : > { %p99_p6 = scmp.eq.s32.totalorder %s484_s15, 1  ;;  %p37_p7 = scmp.eq.s32.totalorder %s34_s20, 0 }
   0xd   : > { %p775_p8 = por %p53_p5, %p52_p3  ;;  %p105_p10 = scmp.eq.s32.totalorder %s485_s16, 1 }
   0xe   : > { %p779_p9 = por %p99_p6, %p46_p1  ;;  %p487_p12 = scmp.ge.s32.totalorder %s707_s14, 2 }
   0xf   : > { %s784_s23 = scalar_select %p37_p7, %s695_s11, %s39_s18  }
  0x10   : > { %p786_p11 = por %p105_p10, %p52_p3  ;;  %p537_p13 = scmp.lt.s32.totalorder %s707_s14, 2 }
  0x11   : > { %s128_s25 = sand.u32 1, %s695_s11   ;;  %s515_s27 = sshll.u32 %s703_s13, 6 }
  0x12   : > { %s488_s26 = sshll.u32 %s128_s25, 6  ;;  %s139_s30 = scalar_lea.hbm %s918_s0, %s515_s27 }
  0x13   : > { %s132_s3 = scalar_lea.vmem [#allocation2], %s488_s26  ;;  %s140_s5 = sshll.u32 %s139_s30, 4  ;;  %s141_s5 = int_to_ptr.hbm [resolvable:$true] %s140_s5 }
  0x14   : > { %s142_s4 = sshll.u32 %s132_s3, 4  ;;  %p530_p0 = pnand %p537_p13, %p769_p4  ;;  %s143_s4 = int_to_ptr.vmem [resolvable:$true] %s142_s4 }
  0x15   : > { %p491_p1 = scmp.ge.s32.totalorder %s707_s14, 1  ;;  %s129_s6 = scalar_lea.sflag [#allocation3], %s128_s25 }
  0x16   : > { %s709_s7 = smov 256   ;;  %s710_s8 = smov 16  }
  0x17   : > { %532 = dma.hbm_to_vmem [thread:$0]  (!%p530_p0), %s141_s5, 1024, %s143_s4, %s129_s6, %s709_s7, %s709_s7, %s710_s8  }
  0x18   : > { %p150_p2 = scmp.lt.s32.totalorder %s707_s14, 3 }
  0x1a   : > { %p151_p3 = pnand %p491_p1, %p150_p2 }
  0x1b   : > { %s802_s15 = sand.u32 (!%p151_p3), 1, %s691_s10  }
  0x1c   : > { %154 = sbr.rel (%p151_p3) target bundleno = 246 (0xf6), region = 28  ;;  %s492_s16 = sshll.u32 (!%p151_p3), %s802_s15, 6 }
  0x1d   : > { %s157_s18 = scalar_lea.sflag (!%p151_p3), [#allocation3], %s802_s15  ;;  %s160_s20 = scalar_lea.vmem (!%p151_p3), [#allocation2], %s492_s16 }
  0x21   : > { %678 = dma.done.wait (%p775_p8), %s157_s18, 1024  }
  0x22   : > { %680 = vsyncadd (%p775_p8), %s157_s18, 4294966272  ;;  %v810_v0 = vld [vmem:[%s160_s20] sm:$0xff]  ;;  %v186_v1 = vld [vmem:[%s160_s20 + $0x10] sm:$0xff]  ;;  %vm256_vm6 = vcmask 261120   ;;  %s516_s21 = sshll.u32 %s699_s12, 7  ;;  %s380_s12 = scalar_lea.sflag [#allocation4], %s802_s15 }
  0x23   : > { %v188_v2 = vld [vmem:[%s160_s20 + $0x20] sm:$0xff]  ;;  %v190_v3 = vld [vmem:[%s160_s20 + $0x30] sm:$0xff]  ;;  %v200_v4 = vmul.f32 %v810_v0, %v810_v0  ;;  %v202_v5 = vmul.f32 %v186_v1, %v186_v1  ;;  %v814_v7 = vld [vmem:[%s160_s20 + $0x8] sm:$0xff]  ;;  %s393_s27 = scalar_lea.hbm %s920_s2, %s516_s21  ;;  %s645_s6 = scalar_lea.hbm %s920_s2, 256 }
  0x24   : > { %v204_v6 = vmul.f32 %v188_v2, %v188_v2  ;;  %v187_v8 = vld [vmem:[%s160_s20 + $0x18] sm:$0xff]  ;;  %v189_v9 = vld [vmem:[%s160_s20 + $0x28] sm:$0xff]  ;;  %v201_v11 = vmul.f32 %v814_v7, %v814_v7  ;;  %v206_v13 = vmul.f32 %v190_v3, %v190_v3  ;;  %v196_v58 = vld [vmem:[%s919_s1 + $0x20] sm:$0xff]  ;;  %s396_s29 = sshll.u32 %s393_s27, 4  ;;  %s397_s29 = int_to_ptr.hbm [resolvable:$true] %s396_s29 }
  0x25   : > { %v191_v10 = vld [vmem:[%s160_s20 + $0x38] sm:$0xff]  ;;  %v203_v12 = vmul.f32 %v187_v8, %v187_v8  ;;  %v208_v14 = vadd.f32 %v202_v5, %v200_v4  ;;  %v205_v15 = vmul.f32 %v189_v9, %v189_v9  ;;  %v192_v59 = vld [vmem:[%s919_s1] sm:$0xff]  ;;  %v197_v60 = vld [vmem:[%s919_s1 + $0x28] sm:$0xff]  ;;  %s493_s20 = sshll.u32 %s802_s15, 7  ;;  %s639_s30 = sshra.s32 %s397_s29, 4  ;;  %s640_s30 = int_to_ptr.hbm [resolvable:$true] %s639_s30 }
  0x26   : > { %v207_v16 = vmul.f32 %v191_v10, %v191_v10  ;;  %v193_v61 = vld [vmem:[%s919_s1 + $0x8] sm:$0xff]  ;;  %v198_v62 = vld [vmem:[%s919_s1 + $0x30] sm:$0xff]  ;;  %s861_s19 = scalar_lea.vmem [#allocation5], %s493_s20  ;;  %s641_s3 = scalar_lea.hbm %s640_s30, 128 }
  0x27   : > { %v217_v17 = vadd.f32 %v203_v12, %v201_v11  ;;  %v209_v18 = vadd.f32 %v208_v14, %v204_v6  ;;  %v194_v63 = vld [vmem:[%s919_s1 + $0x10] sm:$0xff]  ;;  %s394_s28 = sshll.u32 %s861_s19, 4  ;;  %p642_p4 = scmp.ne.s32.totalorder %s640_s30, %s641_s3  ;;  %s395_s28 = int_to_ptr.vmem [resolvable:$true] %s394_s28 }
  0x28   : > { %p646_p7 = scmp.lt.s32.totalorder %s640_s30, %s920_s2  ;;  %p647_p8 = scmp.lt.s32.totalorder %s645_s6, %s641_s3 }
  0x29   : > { %v218_v19 = vadd.f32 %v217_v17, %v205_v15  ;;  %v210_v20 = vadd.f32 %v209_v18, %v206_v13  ;;  %p643_p5 = pnand %p642_p4, %p779_p9 }
  0x2a   : > { %p648_p10 = por %p647_p8, %p646_p7 }
  0x2b   : > { %v219_v21 = vadd.f32 %v218_v19, %v207_v16  ;;  %v211_v22 = vrot.slane %v210_v20, 4  ;;  %p644_p6 = pneg %p643_p5 }
  0x2d   : > { %v220_v23 = vrot.slane %v219_v21, 4  ;;  %v212_v24 = vadd.f32 %v211_v22, %v210_v20  ;;  %p649_p13 = pnand %p648_p10, %p644_p6 }
  0x2f   : > { %v221_v25 = vadd.f32 %v220_v23, %v219_v21  ;;  %v213_v26 = vrot.slane %v212_v24, 2 }
  0x31   : > { %v222_v27 = vrot.slane %v221_v25, 2  ;;  %v214_v28 = vadd.f32 %v213_v26, %v212_v24 }
  0x33   : > { %v223_v29 = vadd.f32 %v222_v27, %v221_v25  ;;  %v215_v30 = vrot.slane %v214_v28, 1 }
  0x35   : > { %v224_v31 = vrot.slane %v223_v29, 1  ;;  %v216_v32 = vadd.f32 %v215_v30, %v214_v28 }
  0x37   : > { %v225_v33 = vadd.f32 %v224_v31, %v223_v29  ;;  %v226_v34 = vmax.f32 %v216_v32, 1e-24 }
  0x39   : > { %v227_v35 = vmax.f32 %v225_v33, 1e-24  ;;  %591 = vrsqrt.f32 %v226_v34  ;;  %vm234_vm0 = vweird.f32 %v226_v34 }
  0x3b   : > { %593 = vrsqrt.f32 %v227_v35  ;;  %vm244_vm2 = vweird.f32 %v227_v35 }
  0x3f   : > { %v592_v36 = vpop.eup %591 }
  0x40   : > { %v229_v38 = vmul.f32 %v592_v36, %v226_v34  ;;  %vm235_vm1 = vweird.f32 %v592_v36 }
  0x41   : > { %v594_v37 = vpop.eup %593  ;;  %vm236_vm4 = vmor %vm234_vm0, %vm235_vm1 }
  0x42   : > { %v239_v39 = vmul.f32 %v594_v37, %v227_v35  ;;  %v230_v40 = vmul.f32 %v592_v36, %v229_v38  ;;  %vm245_vm3 = vweird.f32 %v594_v37 }
  0x43   : > { %vm246_vm5 = vmor %vm244_vm2, %vm245_vm3 }
  0x44   : > { %v240_v41 = vmul.f32 %v594_v37, %v239_v39  ;;  %v231_v42 = vmul.f32 0.5, %v230_v40 }
  0x46   : > { %v241_v43 = vmul.f32 0.5, %v240_v41  ;;  %v232_v44 = vsub.f32 1.5, %v231_v42 }
  0x48   : > { %v242_v45 = vsub.f32 1.5, %v241_v43  ;;  %v233_v46 = vmul.f32 %v592_v36, %v232_v44 }
  0x4a   : > { %v243_v47 = vmul.f32 %v594_v37, %v242_v45  ;;  %v237_v48 = vsel %vm236_vm4, %v592_v36, %v233_v46 }
  0x4b   : > { %v254_v49 = vmul.f32 %v237_v48, %v190_v3  ;;  %v252_v51 = vmul.f32 %v237_v48, %v188_v2  ;;  %v250_v54 = vmul.f32 %v237_v48, %v186_v1  ;;  %v248_v56 = vmul.f32 %v237_v48, %v810_v0  ;;  %v199_v0 = vld [vmem:[%s919_s1 + $0x38] sm:$0xff] }
  0x4c   : > { %v247_v50 = vsel %vm246_vm5, %v594_v37, %v243_v47  ;;  %v195_v1 = vld [vmem:[%s919_s1 + $0x18] sm:$0xff] }
  0x4d   : > { %v255_v52 = vmul.f32 %v247_v50, %v191_v10  ;;  %v253_v53 = vmul.f32 %v247_v50, %v189_v9  ;;  %517 = vmatpush.msra.mxu2 %v254_v49  ;;  %293 = vmatpush.msra.mxu0 %v254_v49  ;;  %v251_v55 = vmul.f32 %v247_v50, %v187_v8 }
  0x4e   : > { %v249_v57 = vmul.f32 %v247_v50, %v814_v7 }
  0x4f   : > { %521 = vmatpush.msra.mxu3 %v255_v52  ;;  %334 = vmatpush.msra.mxu1 %v255_v52 }
  0x50   : > { %518 = vmatpush.msra.mxu2 %v252_v51  ;;  %294 = vmatpush.msra.mxu0 %v252_v51 }
  0x51   : > { %522 = vmatpush.msra.mxu3 %v253_v53  ;;  %335 = vmatpush.msra.mxu1 %v253_v53 }
  0x52   : > { %519 = vmatpush.msra.mxu2 %v250_v54  ;;  %295 = vmatpush.msra.mxu0 %v250_v54 }
  0x53   : > { %523 = vmatpush.msra.mxu3 %v251_v55  ;;  %336 = vmatpush.msra.mxu1 %v251_v55 }
  0x54   : > { %520 = vmatpush.msra.mxu2 %v248_v56  ;;  %296 = vmatpush.msra.mxu0 %v248_v56 }
  0x55   : > { %524 = vmatpush.msra.mxu3 %v249_v57  ;;  %498 = vmatmul.msk.f32.vlgmr.msra.gmra.mxu2 %vm256_vm6, %v196_v58 }
  0x56   : > { %506 = vmatmul.msk.f32.vlgmr.msra.gmra.mxu3 %vm256_vm6, %v196_v58  ;;  %337 = vmatpush.msra.mxu1 %v249_v57 }
  0x57   : > { %494 = vmatmul.msk.f32.vlgmr.msra.gmra.mxu0 %vm256_vm6, %v192_v59  ;;  %502 = vmatmul.msk.f32.vlgmr.msra.gmra.mxu1 %vm256_vm6, %v192_v59 }
  0x5d   : > { %499 = vmatmul.msk.f32.gmra.mxu2 %vm256_vm6, %v197_v60 }
  0x5e   : > { %507 = vmatmul.msk.f32.gmra.mxu3 %vm256_vm6, %v197_v60 }
  0x5f   : > { %495 = vmatmul.msk.f32.gmra.mxu0 %vm256_vm6, %v193_v61  ;;  %503 = vmatmul.msk.f32.gmra.mxu1 %vm256_vm6, %v193_v61 }
  0x65   : > { %500 = vmatmul.msk.f32.gmra.mxu2 %vm256_vm6, %v198_v62 }
  0x66   : > { %508 = vmatmul.msk.f32.gmra.mxu3 %vm256_vm6, %v198_v62 }
  0x67   : > { %496 = vmatmul.msk.f32.gmra.mxu0 %vm256_vm6, %v194_v63  ;;  %504 = vmatmul.msk.f32.gmra.mxu1 %vm256_vm6, %v194_v63 }
  0x6d   : > { %501 = vmatmul.msk.f32.gmra.mxu2 %vm256_vm6, %v199_v0 }
  0x6e   : > { %509 = vmatmul.msk.f32.gmra.mxu3 %vm256_vm6, %v199_v0 }
  0x6f   : > { %497 = vmatmul.msk.f32.gmra.mxu0 %vm256_vm6, %v195_v1  ;;  %505 = vmatmul.msk.f32.gmra.mxu1 %vm256_vm6, %v195_v1 }
  0xd4   : > { %v298_v2 = vpop.f32.mrf.mxu0  ;;  %v339_v3 = vpop.f32.mrf.mxu1 }
  0xd5   : > { %363 = vst [vmem:[%s861_s19] sm:$0xff] %v298_v2 }
  0xd6   : > { %364 = vst [vmem:[%s861_s19 + $0x8] sm:$0xff] %v339_v3 }
  0xd8   : > { %v310_v4 = vpop.f32.mrf.mxu2 }
  0xd9   : > { %371 = vst [vmem:[%s861_s19 + $0x40] sm:$0xff] %v310_v4  ;;  %v351_v5 = vpop.f32.mrf.mxu3 }
  0xda   : > { %372 = vst [vmem:[%s861_s19 + $0x48] sm:$0xff] %v351_v5 }
  0xdc   : > { %v301_v6 = vpop.f32.mrf.mxu0  ;;  %v342_v7 = vpop.f32.mrf.mxu1 }
  0xdd   : > { %365 = vst [vmem:[%s861_s19 + $0x10] sm:$0xff] %v301_v6 }
  0xde   : > { %366 = vst [vmem:[%s861_s19 + $0x18] sm:$0xff] %v342_v7 }
  0xe0   : > { %v313_v8 = vpop.f32.mrf.mxu2 }
  0xe1   : > { %373 = vst [vmem:[%s861_s19 + $0x50] sm:$0xff] %v313_v8  ;;  %v354_v9 = vpop.f32.mrf.mxu3 }
  0xe2   : > { %374 = vst [vmem:[%s861_s19 + $0x58] sm:$0xff] %v354_v9 }
  0xe4   : > { %v304_v10 = vpop.f32.mrf.mxu0  ;;  %v345_v11 = vpop.f32.mrf.mxu1 }
  0xe5   : > { %367 = vst [vmem:[%s861_s19 + $0x20] sm:$0xff] %v304_v10 }
  0xe6   : > { %368 = vst [vmem:[%s861_s19 + $0x28] sm:$0xff] %v345_v11 }
  0xe8   : > { %v316_v12 = vpop.f32.mrf.mxu2 }
  0xe9   : > { %375 = vst [vmem:[%s861_s19 + $0x60] sm:$0xff] %v316_v12  ;;  %v357_v13 = vpop.f32.mrf.mxu3 }
  0xea   : > { %376 = vst [vmem:[%s861_s19 + $0x68] sm:$0xff] %v357_v13 }
  0xec   : > { %v307_v14 = vpop.f32.mrf.mxu0  ;;  %v348_v15 = vpop.f32.mrf.mxu1 }
  0xed   : > { %369 = vst [vmem:[%s861_s19 + $0x30] sm:$0xff] %v307_v14 }
  0xee   : > { %370 = vst [vmem:[%s861_s19 + $0x38] sm:$0xff] %v348_v15 }
  0xf0   : > { %v319_v16 = vpop.f32.mrf.mxu2 }
  0xf1   : > { %377 = vst [vmem:[%s861_s19 + $0x70] sm:$0xff] %v319_v16  ;;  %v360_v17 = vpop.f32.mrf.mxu3 }
  0xf2   : > { %378 = vst [vmem:[%s861_s19 + $0x78] sm:$0xff] %v360_v17 }
  0xf3   : > { %652 = shalt.err (!%p649_p13)
}
  0xf4   : > { %s711_s15 = smov 256   ;;  %s712_s16 = smov 16  }
  0xf5   : > { %527 = dma.vmem_to_hbm [thread:$0]  (%p779_p9), %s395_s28, 2048, %s397_s29, %s380_s12, %s711_s15, %s711_s15, %s712_s16  }
  0xf6 PF: > { %s411_s18 = sand.u32 1, %s687_s9   ;;  %p534_p0 = pnand %p487_p12, %p786_p11 }
  0xf7   : > { %s412_s20 = scalar_lea.sflag [#allocation4], %s411_s18 }
  0xf8   : > { %p535_p1 = pneg %p534_p0 }
  0xfa   : > { %682 = dma.done.wait (%p535_p1), %s412_s20, 2048  }
  0xfb   : > { %684 = vsyncadd (%p535_p1), %s412_s20, 4294965248  ;;  %s18_s14 = sadd.s32 1, %s707_s14   ;;  %s925_s9 = smov %s691_s10 }
  0xfc   : > { %p15_p2 = scmp.ge.s32.totalorder %s18_s14, 4   ;;  %s926_s10 = smov %s695_s11 }
  0xfd   : > { %s927_s11 = smov %s784_s23  ;;  %s928_s12 = smov %s703_s13 }
  0xfe   : > { %s929_s13 = smov %s931_s17  ;;  %17 = sbr.rel (!%p15_p2) target bundleno = 6 (0x6), region = 73 }
 0x103   :  { %418 = vsyncpa [#allocation3], 1 }
 0x104   :  { %420 = vsyncpa [#allocation3 + $0x1], 1 }
 0x105   :  { %421 = vsyncpa [#allocation4], 1 }
 0x106   :  { %423 = vsyncpa [#allocation4 + $0x1], 1 }

</bundles_post_ra>
